<compile_context>
chip_gen: v7x
topology: tpu7x:2x2x1
jax: 0.10.0
libtpu: 0.0.40
codegen_flags: <defaults>
</compile_context>

<pallas_src>
import functools

import jax
import jax.numpy as jnp
from jax.experimental import pallas as pl
from jax.experimental.pallas import tpu as pltpu

_LANE = 128
_SUBLANE = 8
_MAX_TILE_ROWS = 2048   # (2048, 128) f32 input block = 1 MiB per pipeline buffer


def _dice_kernel(pr_ref, gt_ref, acc_ref, *, steps, block_rows, rows,
                 num_blocks, nsplit, apply_sigmoid):
    """Accumulates [tp, denom] partial sums into a (2, 8, 128) resident block.

      acc[0] += per-lane partials of gt * act(pr)      (-> tp)
      acc[1] += per-lane partials of act(pr) + gt      (-> sum(pr) + sum(gt))
    """
    s = pl.program_id(0)          # split axis (TensorCore sharding on v7x)
    j = pl.program_id(1)          # reduction steps within this split

    @pl.when(j == 0)
    def _init():
        acc_ref[...] = jnp.zeros_like(acc_ref)

    sub = block_rows // _SUBLANE

    def activate(x):
        if apply_sigmoid:
            # sigmoid(x) == 0.5 * (tanh(x/2) + 1): one EUP push per vreg.
            return 0.5 * (jnp.tanh(0.5 * x) + 1.0)
        return x

    def accumulate(pr_act, gt_f):
        # (block_rows, 128) -> (sub, 8, 128) is (8,128)-tile aligned -> free;
        # sum(axis=0) is pure vreg+vreg VPU adds (no XLU), then a tiny
        # (2, 8, 128) accumulator read-modify-write.
        tp = (gt_f * pr_act).reshape(sub, _SUBLANE, _LANE).sum(axis=0)
        dn = (pr_act + gt_f).reshape(sub, _SUBLANE, _LANE).sum(axis=0)
        acc_ref[0] += tp
        acc_ref[1] += dn

    pr = pr_ref[...].astype(jnp.float32)
    gt = gt_ref[...].astype(jnp.float32)

    full_blocks = rows // block_rows          # blocks with no invalid rows
    tail_possible = (rows % block_rows != 0) or (nsplit * steps != num_blocks)

    if not tail_possible:
        # Every step of every split sees a fully valid block: mask-free path.
        accumulate(activate(pr), gt)
    else:
        # Intended (unclamped) block id.  The input index_map clamps the DMA
        # to a valid block; the tail mask below zeroes rows whose *intended*
        # flat index is out of range (partial last block or re-read clamp).
        block_id = s * steps + j

        @pl.when(block_id < full_blocks)
        def _interior():                      # mask-free fast path
            accumulate(activate(pr), gt)

        @pl.when(block_id >= full_blocks)
        def _tail():                          # partial / fully-masked block
            row_id = block_id * block_rows + jax.lax.broadcasted_iota(
                jnp.int32, (block_rows, _LANE), 0)
            valid = row_id < rows
            pr_act = jnp.where(valid, activate(pr), 0.0)   # NaN-safe select
            gt_f = jnp.where(valid, gt, 0.0)
            accumulate(pr_act, gt_f)


def _sublane_align(dtype):
    itemsize = jnp.dtype(dtype).itemsize
    return max(_SUBLANE, 32 // max(1, itemsize))   # f32->8, bf16->16, int8->32


def _num_tensorcores():
    """Best-effort TensorCore count (v5e/v6e -> 1, v7x -> 2)."""
    try:
        info = pltpu.get_tpu_info()
    except Exception:
        return 1
    for attr in ("num_cores", "core_count", "tensorcore_count",
                 "num_tensorcores", "cores_per_chip"):
        v = getattr(info, attr, None)
        if isinstance(v, int) and v > 0:
            return v
    return 1


def _dice_terms_jnp(pr, gt, apply_sigmoid):
    """Plain-jnp tp / denom for tiny inputs and the ragged <128-element tail."""
    pr = pr.astype(jnp.float32)
    gt = gt.astype(jnp.float32)
    if apply_sigmoid:
        pr = jax.nn.sigmoid(pr)
    tp = jnp.sum(gt * pr)
    denom = jnp.sum(pr) + jnp.sum(gt)
    return tp, denom


def dice_loss(y_pr, y_gt, *, eps=1e-7, activation="sigmoid"):
    """1 - f_score(activation(y_pr), y_gt), matching the PyTorch DiceLoss."""
    if activation in (None, "none"):
        apply_sigmoid = False
    elif activation == "sigmoid":
        apply_sigmoid = True
    else:
        # TODO(synk): 'softmax2d' (per-pixel channel softmax) not implemented.
        raise NotImplementedError(
            "Only 'sigmoid' / 'none' activations are implemented.")

    total = int(y_pr.size)
    pr_flat = y_pr.reshape(-1)
    gt_flat = y_gt.reshape(-1)
    if gt_flat.dtype == jnp.bool_:
        gt_flat = gt_flat.astype(jnp.int8)   # keep the mask stream tiny

    rows = total // _LANE
    rem = total - rows * _LANE

    if rows < _SUBLANE:
        # Tiny input: launch overhead dominates and partial-block corner cases
        # abound -- use plain jnp.
        tp, denom = _dice_terms_jnp(pr_flat, gt_flat, apply_sigmoid)
        return 1.0 - (2.0 * tp + eps) / (denom + eps)

    # Ragged <128-element tail handled in the wrapper (no full-array pad copy).
    tp_tail = jnp.float32(0.0)
    denom_tail = jnp.float32(0.0)
    if rem:
        tp_tail, denom_tail = _dice_terms_jnp(
            pr_flat[rows * _LANE:], gt_flat[rows * _LANE:], apply_sigmoid)
        pr_flat = pr_flat[:rows * _LANE]   # rare misaligned path: one slice copy
        gt_flat = gt_flat[:rows * _LANE]
    pr2 = pr_flat.reshape(rows, _LANE)     # layout-preserving reshape
    gt2 = gt_flat.reshape(rows, _LANE)

    row_align = max(_sublane_align(pr2.dtype), _sublane_align(gt2.dtype))
    block_rows = min(_MAX_TILE_ROWS, -(-rows // row_align) * row_align)
    num_blocks = -(-rows // block_rows)
    nsplit = max(1, min(_num_tensorcores(), num_blocks))
    steps = -(-num_blocks // nsplit)
    last_block = num_blocks - 1

    def in_map(s, j):
        # Clamp so the DMA window always stays in-bounds; the in-kernel tail
        # mask (based on the unclamped index) discards any re-read data.
        return (jnp.minimum(s * steps + j, last_block), 0)

    kernel = functools.partial(
        _dice_kernel, steps=steps, block_rows=block_rows, rows=rows,
        num_blocks=num_blocks, nsplit=nsplit, apply_sigmoid=apply_sigmoid)

    acc = pl.pallas_call(
        kernel,
        out_shape=jax.ShapeDtypeStruct((nsplit * 2, _SUBLANE, _LANE),
                                       jnp.float32),
        grid=(nsplit, steps),
        in_specs=[
            pl.BlockSpec((block_rows, _LANE), in_map),
            pl.BlockSpec((block_rows, _LANE), in_map),
        ],
        out_specs=pl.BlockSpec((2, _SUBLANE, _LANE), lambda s, j: (s, 0, 0)),
        compiler_params=pltpu.CompilerParams(
            dimension_semantics=("parallel", "arbitrary"),
            vmem_limit_bytes=32 * 1024 * 1024),
    )(pr2, gt2)

    # Tiny (nsplit*2, 8, 128) final reduction + scalar math in the wrapper.
    sums = acc.reshape(nsplit, 2, _SUBLANE * _LANE).sum(axis=(0, 2))
    tp = sums[0] + tp_tail
    denom = sums[1] + denom_tail
    score = (2.0 * tp + eps) / (denom + eps)
    return 1.0 - score


class DiceLoss:
    __name__ = "dice_loss"

    def __init__(self, eps=1e-7, activation="sigmoid"):
        self.eps = eps
        self.activation = activation

    def __call__(self, y_pr, y_gt):
        return dice_loss(y_pr, y_gt, eps=self.eps, activation=self.activation)


def _reference(y_pr, y_gt, eps=1e-7):
    pr = jax.nn.sigmoid(y_pr.astype(jnp.float32))
    gt = y_gt.astype(jnp.float32)
    tp = jnp.sum(gt * pr)
    fp = jnp.sum(pr) - tp
    fn = jnp.sum(gt) - tp
    return 1.0 - (2.0 * tp + eps) / (2.0 * tp + fn + fp + eps)


if __name__ == "__main__":
    key = jax.random.PRNGKey(0)
    k1, k2 = jax.random.split(key)
    # NCHW inputs, same convention as the PyTorch module.
    y_pr = jax.random.normal(k1, (2, 4, 16, 16), dtype=jnp.float32)            # logits
    y_gt = (jax.random.uniform(k2, (2, 4, 16, 16)) > 0.5).astype(jnp.float32)  # binary mask

    loss_fn = DiceLoss(eps=1e-7, activation="sigmoid")
    loss = jax.block_until_ready(loss_fn(y_pr, y_gt))

    ref = _reference(y_pr, y_gt)
    assert jnp.allclose(loss, ref, rtol=1e-5, atol=1e-6), (loss, ref)
    print("KERNEL_OK")
</pallas_src>

<mosaic_0001>
module attributes {stable_mosaic.version = 11 : i64} {
  func.func @_dice_kernel(%arg0: i32, %arg1: i32, %arg2: memref<16x128xf32, #tpu.memory_space<vmem>>, %arg3: memref<16x128xf32, #tpu.memory_space<vmem>>, %arg4: memref<2x8x128xf32, #tpu.memory_space<vmem>>) attributes {dimension_semantics = [#tpu.dimension_semantics<parallel>, #tpu.dimension_semantics<arbitrary>], iteration_bounds = array<i64: 1, 1>, scalar_prefetch = 0 : i64, scratch_operands = 0 : i64, tpu.core_type = #tpu.core_type<tc>, window_params = [{transform_indices = @transform_0, window_bounds = array<i64: 16, 128>}, {transform_indices = @transform_1, window_bounds = array<i64: 16, 128>}, {transform_indices = @transform_2, window_bounds = array<i64: 2, 8, 128>}]} {
    %c0_i32 = arith.constant 0 : i32
    %0 = arith.cmpi eq, %arg1, %c0_i32 : i32
    %1 = arith.extui %0 : i1 to i32
    %c0_i32_0 = arith.constant 0 : i32
    %2 = arith.cmpi ne, %1, %c0_i32_0 : i32
    scf.if %2 {
      %cst_19 = arith.constant 0.000000e+00 : f32
      %30 = vector.broadcast %cst_19 : f32 to vector<2x8x128xf32>
      %c0_20 = arith.constant 0 : index
      %c0_21 = arith.constant 0 : index
      %c0_22 = arith.constant 0 : index
      %31 = vector.load %arg4[%c0_20, %c0_21, %c0_22] : memref<2x8x128xf32, #tpu.memory_space<vmem>>, vector<2x8x128xf32>
      tpu.vector_store %arg4[%c0_20, %c0_21, %c0_22], %30 {strides = array<i32>} : memref<2x8x128xf32, #tpu.memory_space<vmem>>, vector<2x8x128xf32>,
    } else {
    }
    %c0 = arith.constant 0 : index
    %c0_1 = arith.constant 0 : index
    %3 = vector.load %arg2[%c0, %c0_1] : memref<16x128xf32, #tpu.memory_space<vmem>>, vector<16x128xf32>
    %c0_2 = arith.constant 0 : index
    %c0_3 = arith.constant 0 : index
    %4 = vector.load %arg3[%c0_2, %c0_3] : memref<16x128xf32, #tpu.memory_space<vmem>>, vector<16x128xf32>
    %cst = arith.constant 5.000000e-01 : f32
    %5 = vector.broadcast %cst : f32 to vector<16x128xf32>
    %6 = arith.mulf %5, %3 : vector<16x128xf32>
    %7 = math.tanh %6 : vector<16x128xf32>
    %cst_4 = arith.constant 1.000000e+00 : f32
    %8 = vector.broadcast %cst_4 : f32 to vector<16x128xf32>
    %9 = arith.addf %7, %8 : vector<16x128xf32>
    %cst_5 = arith.constant 5.000000e-01 : f32
    %10 = vector.broadcast %cst_5 : f32 to vector<16x128xf32>
    %11 = arith.mulf %10, %9 : vector<16x128xf32>
    %12 = arith.mulf %4, %11 : vector<16x128xf32>
    %13 = vector.shape_cast %12 : vector<16x128xf32> to vector<2x8x128xf32>
    %cst_6 = arith.constant dense<0.000000e+00> : vector<8x128xf32>
    %14 = vector.multi_reduction <add>, %13, %cst_6 [0] : vector<2x8x128xf32> to vector<8x128xf32>
    %15 = arith.addf %11, %4 : vector<16x128xf32>
    %16 = vector.shape_cast %15 : vector<16x128xf32> to vector<2x8x128xf32>
    %cst_7 = arith.constant dense<0.000000e+00> : vector<8x128xf32>
    %17 = vector.multi_reduction <add>, %16, %cst_7 [0] : vector<2x8x128xf32> to vector<8x128xf32>
    %c0_8 = arith.constant 0 : index
    %c0_9 = arith.constant 0 : index
    %c0_10 = arith.constant 0 : index
    %18 = vector.load %arg4[%c0_8, %c0_9, %c0_10] : memref<2x8x128xf32, #tpu.memory_space<vmem>>, vector<1x8x128xf32>
    %19 = vector.shape_cast %18 : vector<1x8x128xf32> to vector<8x128xf32>
    %20 = arith.addf %19, %14 : vector<8x128xf32>
    %c0_11 = arith.constant 0 : index
    %c0_12 = arith.constant 0 : index
    %c0_13 = arith.constant 0 : index
    %21 = vector.load %arg4[%c0_11, %c0_12, %c0_13] : memref<2x8x128xf32, #tpu.memory_space<vmem>>, vector<1x8x128xf32>
    %22 = vector.shape_cast %21 : vector<1x8x128xf32> to vector<8x128xf32>
    %23 = vector.shape_cast %20 : vector<8x128xf32> to vector<1x8x128xf32>
    tpu.vector_store %arg4[%c0_11, %c0_12, %c0_13], %23 {strides = array<i32>} : memref<2x8x128xf32, #tpu.memory_space<vmem>>, vector<1x8x128xf32>,
    %c1 = arith.constant 1 : index
    %c0_14 = arith.constant 0 : index
    %c0_15 = arith.constant 0 : index
    %24 = vector.load %arg4[%c1, %c0_14, %c0_15] : memref<2x8x128xf32, #tpu.memory_space<vmem>>, vector<1x8x128xf32>
    %25 = vector.shape_cast %24 : vector<1x8x128xf32> to vector<8x128xf32>
    %26 = arith.addf %25, %17 : vector<8x128xf32>
    %c1_16 = arith.constant 1 : index
    %c0_17 = arith.constant 0 : index
    %c0_18 = arith.constant 0 : index
    %27 = vector.load %arg4[%c1_16, %c0_17, %c0_18] : memref<2x8x128xf32, #tpu.memory_space<vmem>>, vector<1x8x128xf32>
    %28 = vector.shape_cast %27 : vector<1x8x128xf32> to vector<8x128xf32>
    %29 = vector.shape_cast %26 : vector<8x128xf32> to vector<1x8x128xf32>
    tpu.vector_store %arg4[%c1_16, %c0_17, %c0_18], %29 {strides = array<i32>} : memref<2x8x128xf32, #tpu.memory_space<vmem>>, vector<1x8x128xf32>,
    return
  }
  func.func @transform_0(%arg0: i32, %arg1: i32) -> (i32, i32) {
    %c1_i32 = arith.constant 1 : i32
    %0 = arith.muli %arg0, %c1_i32 : i32
    %1 = arith.addi %0, %arg1 : i32
    %c0_i32 = arith.constant 0 : i32
    %2 = arith.minsi %1, %c0_i32 : i32
    %c0_i32_0 = arith.constant 0 : i32
    %c0_i32_1 = arith.constant 0 : i32
    return %2, %c0_i32_0 : i32, i32
  }
  func.func @transform_1(%arg0: i32, %arg1: i32) -> (i32, i32) {
    %c1_i32 = arith.constant 1 : i32
    %0 = arith.muli %arg0, %c1_i32 : i32
    %1 = arith.addi %0, %arg1 : i32
    %c0_i32 = arith.constant 0 : i32
    %2 = arith.minsi %1, %c0_i32 : i32
    %c0_i32_0 = arith.constant 0 : i32
    %c0_i32_1 = arith.constant 0 : i32
    return %2, %c0_i32_0 : i32, i32
  }
  func.func @transform_2(%arg0: i32, %arg1: i32) -> (i32, i32, i32) {
    %c0_i32 = arith.constant 0 : i32
    %c0_i32_0 = arith.constant 0 : i32
    %c0_i32_1 = arith.constant 0 : i32
    return %arg0, %c0_i32, %c0_i32_0 : i32, i32, i32
  }
}

</mosaic_0001>

<bundles_post_ra>
// kernel: tpu_custom_call.1
= control target key start
LH: loop header
LB: loop body
LE: loop exit
PB: predicated region body
PF: predicated region fallthrough
CT: control target
= control target key end

     0   :  { %7 = vsyncpa [#allocation3], 0  ;;  %s260_s0 = inlined_call_operand.hbm [shape: f32[16,128], index: 0, kind: input, shape index: {}]   ;;  %s261_s1 = inlined_call_operand.hbm [shape: f32[16,128], index: 1, kind: input, shape index: {}]   ;;  %s262_s2 = inlined_call_operand.hbm [shape: f32[2,8,128], index: 2, kind: output, shape index: {}]  }
   0x1   :  { %8 = vsyncpa [#allocation6], 0 }
   0x2   :  { %9 = vsyncpa [#allocation4], 0  ;;  %s195_s9 = smov [#allocation2]   ;;  %s123_s13 = scalar_lea.hbm %s260_s0, 256 }
   0x3   :  { %s21_s10 = sshll.u32 %s195_s9, 4  ;;  %p124_p0 = scmp.ne.s32.totalorder %s260_s0, %s123_s13  ;;  %s22_s10 = int_to_ptr.vmem [resolvable:$true] %s21_s10 }
   0x4   :  { %p127_p1 = scmp.lt.u32.totalorder %s123_s13, %s260_s0 }
   0x6   :  { %p129_p2 = pnand %p127_p1, %p124_p0 }
   0x8   :  { %132 = shalt.err (!%p129_p2)
}
   0x9   :  { %s133_s18 = scalar_lea.vmem %s22_s10, 256  ;;  %p138_p4 = scmp.lt.s32.totalorder %s22_s10, %s22_s10 }
   0xa   :  { %p134_p3 = scmp.ne.s32.totalorder %s22_s10, %s133_s18  ;;  %p139_p5 = scmp.lt.s32.totalorder %s133_s18, %s133_s18 }
   0xc   :  { %p140_p6 = por %p139_p5, %p138_p4 }
   0xe   :  { %p141_p7 = pnand %p140_p6, %p134_p3 }
  0x10   :  { %144 = shalt.err (!%p141_p7)
}
  0x11   :  { %s196_s19 = smov 128   ;;  %s197_s20 = smov 8  }
  0x12   :  { %27 = dma.hbm_to_vmem [thread:$0]  %s260_s0, 256, %s22_s10, [#allocation3], %s196_s19, %s196_s19, %s197_s20  }
  0x13   :  { %s198_s23 = smov [#allocation5]   ;;  %s145_s27 = scalar_lea.hbm %s261_s1, 256 }
  0x14   :  { %s39_s24 = sshll.u32 %s198_s23, 4  ;;  %p146_p8 = scmp.ne.s32.totalorder %s261_s1, %s145_s27  ;;  %s40_s24 = int_to_ptr.vmem [resolvable:$true] %s39_s24 }
  0x15   :  { %p149_p9 = scmp.lt.u32.totalorder %s145_s27, %s261_s1 }
  0x17   :  { %p151_p10 = pnand %p149_p9, %p146_p8 }
  0x19   :  { %154 = shalt.err (!%p151_p10)
}
  0x1a   :  { %s155_s4 = scalar_lea.vmem %s40_s24, 256  ;;  %p160_p12 = scmp.lt.s32.totalorder %s40_s24, %s40_s24 }
  0x1b   :  { %p156_p11 = scmp.ne.s32.totalorder %s40_s24, %s155_s4  ;;  %p161_p13 = scmp.lt.s32.totalorder %s155_s4, %s155_s4 }
  0x1d   :  { %p162_p0 = por %p161_p13, %p160_p12 }
  0x1f   :  { %p163_p1 = pnand %p162_p0, %p156_p11 }
  0x21   :  { %166 = shalt.err (!%p163_p1)
}
  0x22   :  { %45 = dma.hbm_to_vmem [thread:$0]  %s261_s1, 256, %s40_s24, [#allocation6], %s196_s19, %s196_s19, %s197_s20  }
  0x23   :  { %189 = dma.done.wait [#allocation3], 256  }
  0x24   :  { %190 = vsyncadd [#allocation3], 4294967040 }
  0x25   :  { %191 = dma.done.wait [#allocation6], 256  }
  0x26   :  { %192 = vsyncadd [#allocation6], 4294967040  ;;  %v66_v0 = vld [vmem:[#allocation2] sm:$0xff]  ;;  %v67_v1 = vld [vmem:[#allocation2 + $0x8] sm:$0xff]  ;;  %s199_s1 = smov [#allocation7]  }
  0x27   :  { %v70_v2 = vmul.f32 0.5, %v66_v0  ;;  %v71_v3 = vmul.f32 0.5, %v67_v1  ;;  %v68_v7 = vld [vmem:[#allocation5] sm:$0xff]  ;;  %v69_v9 = vld [vmem:[#allocation5 + $0x8] sm:$0xff]  ;;  %s96_s6 = sshll.u32 %s199_s1, 4  ;;  %s97_s6 = int_to_ptr.vmem [resolvable:$true] %s96_s6 }
  0x28   :  { %s167_s7 = scalar_lea.vmem %s97_s6, 256  ;;  %p172_p3 = scmp.lt.s32.totalorder %s97_s6, %s97_s6 }
  0x29   :  { %119 = vtanh.f32 %v70_v2  ;;  %p168_p2 = scmp.ne.s32.totalorder %s97_s6, %s167_s7  ;;  %p173_p4 = scmp.lt.s32.totalorder %s167_s7, %s167_s7 }
  0x2a   :  { %121 = vtanh.f32 %v71_v3 }
  0x2b   :  { %p174_p5 = por %p173_p4, %p172_p3 }
  0x2d   :  { %p175_p6 = pnand %p174_p5, %p168_p2 }
  0x33   :  { %v120_v4 = vpop.eup %119 }
  0x34   :  { %v122_v5 = vpop.eup %121  ;;  %v74_v6 = vadd.f32 1.0, %v120_v4 }
  0x35   :  { %v75_v8 = vadd.f32 1.0, %v122_v5 }
  0x36   :  { %v76_v10 = vmul.f32 0.5, %v74_v6 }
  0x37   :  { %v77_v11 = vmul.f32 0.5, %v75_v8 }
  0x38   :  { %v78_v12 = vmul.f32 %v76_v10, %v68_v7  ;;  %v81_v13 = vadd.f32 %v76_v10, %v68_v7 }
  0x39   :  { %v79_v14 = vmul.f32 %v77_v11, %v69_v9  ;;  %v82_v15 = vadd.f32 %v77_v11, %v69_v9 }
  0x3b   :  { %v80_v16 = vadd.f32 %v79_v14, %v78_v12  ;;  %v83_v17 = vadd.f32 %v82_v15, %v81_v13 }
  0x3d   :  { %86 = vst [vmem:[#allocation7] sm:$0xff] %v80_v16  ;;  %90 = vst [vmem:[#allocation7 + $0x8] sm:$0xff] %v83_v17 }
  0x3e   :  { %178 = shalt.err (!%p175_p6)
}
  0x3f   :  { %s179_s10 = scalar_lea.hbm %s262_s2, 256 }
  0x40   :  { %p180_p7 = scmp.ne.s32.totalorder %s262_s2, %s179_s10  ;;  %p183_p8 = scmp.lt.u32.totalorder %s179_s10, %s262_s2 }
  0x42   :  { %p185_p9 = pnand %p183_p8, %p180_p7 }
  0x44   :  { %188 = shalt.err (!%p185_p9)
}
  0x45   :  { %102 = dma.vmem_to_hbm [thread:$0]  %s97_s6, 256, %s262_s2, [#allocation4], %s196_s19, %s196_s19, %s197_s20  }
  0x46   :  { %193 = dma.done.wait [#allocation4], 256  }
  0x47   :  { %194 = vsyncadd [#allocation4], 4294967040 }
  0x48   :  { %106 = vsyncpa [#allocation3], 1 }
  0x49   :  { %107 = vsyncpa [#allocation6], 1 }
  0x4a   :  { %108 = vsyncpa [#allocation4], 1 }

</bundles_post_ra>
